<compile_context>
chip_gen: v6e
topology: v6e:2x2x1
jax: 0.10.0
libtpu: 0.0.40
codegen_flags: <defaults>
</compile_context>

<pallas_src>
import jax
import jax.numpy as jnp
from jax.experimental import pallas as pl
from jax.experimental.pallas import tpu as pltpu


def _round_up(x, m):
    return ((x + m - 1) // m) * m


def _choose_tile(batch, tile_b):
    """128-aligned batch tile, capped at tile_b; split so >= 2 grid steps when possible."""
    b128 = _round_up(max(batch, 1), 128)
    tb = min(_round_up(tile_b, 128), b128)
    # v7x has 2 TensorCores; if the whole batch fits in one tile but is big
    # enough to split, halve the tile so the "parallel" axis has >= 2 steps.
    if b128 // tb < 2 and b128 >= 256:
        tb = _round_up(-(-b128 // 2), 128)
    return tb


def _vmem_limit_bytes(tb, d_in, d_h1, d_h2, x_itemsize, w_itemsize):
    streamed = 2 * tb * d_in * x_itemsize + 2 * tb * 4            # x tile + (1,1,TB) out, double-buffered
    resident = 2 * ((d_in * d_h1 + d_h1 * d_h2) * w_itemsize      # w1, w2 (default double-buffered)
                    + (d_h1 + 2 * d_h2) * 4)                      # b1, b2, w3 row (f32)
    interm = tb * (d_in + d_h1 + d_h2) * 4                        # in-kernel casts + f32 intermediates
    need = int(1.5 * (streamed + resident + interm)) + (4 << 20)
    return max(min(need, 64 << 20), 32 << 20)


def _critic_kernel(x_ref, w1_ref, b1_ref, w2_ref, b2_ref, w3_ref, b3_ref, out_ref):
    # x arrives in its stored dtype; cast to the matmul dtype in-kernel
    # (no separate HBM cast pass in the wrapper).
    x = x_ref[...].astype(w1_ref.dtype)                       # (TB, d_in)

    # fc1 + ReLU  (MXU with f32 accumulation; bias/ReLU on the VPU in f32)
    h1 = jnp.dot(x, w1_ref[...], preferred_element_type=jnp.float32)
    h1 = jnp.maximum(h1 + b1_ref[...], 0.0)                   # (TB, 2H) f32

    # fc2 + ReLU
    h2 = jnp.dot(h1.astype(w2_ref.dtype), w2_ref[...],
                 preferred_element_type=jnp.float32)
    h2 = jnp.maximum(h2 + b2_ref[...], 0.0)                   # (TB, H) f32

    # fc3: out[b] = sum_k h2[b, k] * w3[k] + b3, produced lane-dense as (1, TB)
    # by contracting the hidden dim of both operands -> no 1-lane MXU output
    # column and an unmasked full-lane store below.
    out = jax.lax.dot_general(
        w3_ref[...], h2,
        dimension_numbers=(((1,), (1,)), ((), ())),
        preferred_element_type=jnp.float32,
    ) + b3_ref[0, 0]                                           # (1, TB) f32

    out_ref[...] = out[None].astype(out_ref.dtype)             # (1, 1, TB)


def prepare_params(params, *, use_bf16=True):
    """Cast / reshape parameters ONCE (outside the per-call forward):
    bf16 weights for the MXU, f32 row-biases, (1,1) f32 fc3 bias for SMEM."""
    w1, b1, w2, b2, w3, b3 = params
    cd = jnp.bfloat16 if use_bf16 else jnp.float32
    return (
        jnp.asarray(w1).astype(cd),
        jnp.asarray(b1, jnp.float32).reshape(1, -1),
        jnp.asarray(w2).astype(cd),
        jnp.asarray(b2, jnp.float32).reshape(1, -1),
        jnp.asarray(w3, jnp.float32).reshape(1, -1),   # (1, H) row for lane-dense fc3
        jnp.asarray(b3, jnp.float32).reshape(1, 1),    # true scalar -> SMEM
    )


def centralized_critic_forward(encoded_all_agents, prepared_params, *, tile_b=1024):
    """encoded_all_agents: (B, num_agents, hidden_dim) float32 -> (B,) float32."""
    w1, b1, w2, b2, w3, b3 = prepared_params
    B = encoded_all_agents.shape[0]
    x = encoded_all_agents.reshape(B, -1)                      # same as torch .view(B, -1)
    d_in, d_h1 = w1.shape
    d_h2 = w2.shape[1]
    assert x.shape[1] == d_in, (x.shape, d_in)

    TB = _choose_tile(B, tile_b)
    B_pad = _round_up(B, TB)
    if B_pad != B:
        # Tail-tile guard only (no dtype pre-pass); padded rows sliced off below.
        x = jnp.pad(x, ((0, B_pad - B), (0, 0)))
    num_tiles = B_pad // TB

    vmem_limit = _vmem_limit_bytes(
        TB, d_in, d_h1, d_h2, x.dtype.itemsize, w1.dtype.itemsize)

    out = pl.pallas_call(
        _critic_kernel,
        out_shape=jax.ShapeDtypeStruct((num_tiles, 1, TB), jnp.float32),
        grid=(num_tiles,),
        in_specs=[
            # streamed activation tile (stored dtype; cast in-kernel)
            pl.BlockSpec((TB, d_in), lambda i: (i, 0)),
            # VMEM-resident weights / biases (constant block index -> no re-DMA)
            pl.BlockSpec((d_in, d_h1), lambda i: (0, 0)),
            pl.BlockSpec((1, d_h1), lambda i: (0, 0)),
            pl.BlockSpec((d_h1, d_h2), lambda i: (0, 0)),
            pl.BlockSpec((1, d_h2), lambda i: (0, 0)),
            pl.BlockSpec((1, d_h2), lambda i: (0, 0)),
            # scalar fc3 bias in SMEM
            pl.BlockSpec(memory_space=pltpu.MemorySpace.SMEM),
        ],
        # lane-dense output: (1, 1, TB) block -> unmasked full-lane stores
        out_specs=pl.BlockSpec((1, 1, TB), lambda i: (i, 0, 0)),
        compiler_params=pltpu.CompilerParams(
            dimension_semantics=("parallel",),
            vmem_limit_bytes=vmem_limit,
        ),
    )(x, w1, b1, w2, b2, w3, b3)

    return out.reshape(B_pad)[:B]                              # squeeze(-1) + drop padding


def init_params(key, num_agents, hidden_dim):
    """Deterministic init mimicking nn.Linear's U(-1/sqrt(fan_in), 1/sqrt(fan_in))."""
    input_dim = num_agents * hidden_dim
    dims = [(input_dim, 2 * hidden_dim), (2 * hidden_dim, hidden_dim), (hidden_dim, 1)]
    params = []
    for (fan_in, fan_out) in dims:
        key, kw, kb = jax.random.split(key, 3)
        bound = 1.0 / (fan_in ** 0.5)
        w = jax.random.uniform(kw, (fan_in, fan_out), jnp.float32, -bound, bound)
        b = jax.random.uniform(kb, (fan_out,), jnp.float32, -bound, bound)
        params += [w, b]
    return tuple(params)


def _reference_forward(encoded_all_agents, params):
    w1, b1, w2, b2, w3, b3 = params
    x = encoded_all_agents.reshape(encoded_all_agents.shape[0], -1)
    x = jax.nn.relu(x @ w1 + b1)
    x = jax.nn.relu(x @ w2 + b2)
    return (x @ w3 + b3)[:, 0]


if __name__ == "__main__":
    num_agents = 4
    hidden_dim = 32

    key = jax.random.PRNGKey(0)
    key, kp = jax.random.split(key)
    params = init_params(kp, num_agents, hidden_dim)
    prepared = prepare_params(params, use_bf16=True)   # weight cast happens once, not per call

    # batch=2 exercises the single-tile path; batch=300 exercises >=2 grid
    # steps (megacore-shardable) plus the padded tail tile.
    for batch in (2, 300):
        key, kx = jax.random.split(key)
        encoded_all_agents = jax.random.normal(
            kx, (batch, num_agents, hidden_dim), jnp.float32)

        out = centralized_critic_forward(encoded_all_agents, prepared)
        out = jax.block_until_ready(out)

        ref = _reference_forward(encoded_all_agents, params)
        assert out.shape == (batch,), out.shape
        # bf16 matmul operands (f32 accumulation) => relaxed tolerance vs f32 reference.
        assert jnp.allclose(out, ref, atol=5e-2, rtol=5e-2), (batch, out, ref)

    print("KERNEL_OK")
</pallas_src>

<mosaic_0001>
module attributes {stable_mosaic.version = 11 : i64} {
  func.func @_critic_kernel(%arg0: i32, %arg1: memref<128x128xf32, #tpu.memory_space<vmem>>, %arg2: memref<128x64xbf16, #tpu.memory_space<vmem>>, %arg3: memref<1x64xf32, #tpu.memory_space<vmem>>, %arg4: memref<64x32xbf16, #tpu.memory_space<vmem>>, %arg5: memref<1x32xf32, #tpu.memory_space<vmem>>, %arg6: memref<1x32xf32, #tpu.memory_space<vmem>>, %arg7: memref<1x1xf32, #tpu.memory_space<smem>>, %arg8: memref<1x1x128xf32, #tpu.memory_space<vmem>>) attributes {dimension_semantics = [#tpu.dimension_semantics<parallel>], iteration_bounds = array<i64: 1>, scalar_prefetch = 0 : i64, scratch_operands = 0 : i64, tpu.core_type = #tpu.core_type<tc>, window_params = [{transform_indices = @transform_0, window_bounds = array<i64: 128, 128>}, {pipeline_mode = #tpu.pipeline_mode<synchronous>, transform_indices = @transform_1, window_bounds = array<i64: 128, 64>}, {pipeline_mode = #tpu.pipeline_mode<synchronous>, transform_indices = @transform_2, window_bounds = array<i64: 1, 64>}, {pipeline_mode = #tpu.pipeline_mode<synchronous>, transform_indices = @transform_3, window_bounds = array<i64: 64, 32>}, {pipeline_mode = #tpu.pipeline_mode<synchronous>, transform_indices = @transform_4, window_bounds = array<i64: 1, 32>}, {pipeline_mode = #tpu.pipeline_mode<synchronous>, transform_indices = @transform_5, window_bounds = array<i64: 1, 32>}, {transform_indices = @transform_6, window_bounds = array<i64: 1, 1>}, {transform_indices = @transform_7, window_bounds = array<i64: 1, 1, 128>}]} {
    %c0 = arith.constant 0 : index
    %c0_0 = arith.constant 0 : index
    %0 = vector.load %arg1[%c0, %c0_0] : memref<128x128xf32, #tpu.memory_space<vmem>>, vector<128x128xf32>
    %1 = arith.truncf %0 : vector<128x128xf32> to vector<128x128xbf16>
    %c0_1 = arith.constant 0 : index
    %c0_2 = arith.constant 0 : index
    %2 = vector.load %arg2[%c0_1, %c0_2] : memref<128x64xbf16, #tpu.memory_space<vmem>>, vector<128x64xbf16>
    %cst = arith.constant dense<0.000000e+00> : vector<128x64xf32>
    %3 = tpu.matmul %1, %2, %cst {dimension_numbers = #tpu.dot_dimension_numbers<[1], [0], [0], [1], [0, 0, 1, 1], [], []>} : vector<128x128xbf16>, vector<128x64xbf16>, vector<128x64xf32> -> vector<128x64xf32>
    %c0_3 = arith.constant 0 : index
    %c0_4 = arith.constant 0 : index
    %4 = vector.load %arg3[%c0_3, %c0_4] : memref<1x64xf32, #tpu.memory_space<vmem>>, vector<1x64xf32>
    %5 = vector.broadcast %4 : vector<1x64xf32> to vector<128x64xf32>
    %6 = arith.addf %3, %5 : vector<128x64xf32>
    %cst_5 = arith.constant 0.000000e+00 : f32
    %7 = vector.broadcast %cst_5 : f32 to vector<128x64xf32>
    %8 = arith.maximumf %6, %7 : vector<128x64xf32>
    %9 = arith.truncf %8 : vector<128x64xf32> to vector<128x64xbf16>
    %c0_6 = arith.constant 0 : index
    %c0_7 = arith.constant 0 : index
    %10 = vector.load %arg4[%c0_6, %c0_7] : memref<64x32xbf16, #tpu.memory_space<vmem>>, vector<64x32xbf16>
    %cst_8 = arith.constant dense<0.000000e+00> : vector<128x32xf32>
    %11 = tpu.matmul %9, %10, %cst_8 {dimension_numbers = #tpu.dot_dimension_numbers<[1], [0], [0], [1], [0, 0, 1, 1], [], []>} : vector<128x64xbf16>, vector<64x32xbf16>, vector<128x32xf32> -> vector<128x32xf32>
    %c0_9 = arith.constant 0 : index
    %c0_10 = arith.constant 0 : index
    %12 = vector.load %arg5[%c0_9, %c0_10] : memref<1x32xf32, #tpu.memory_space<vmem>>, vector<1x32xf32>
    %13 = vector.broadcast %12 : vector<1x32xf32> to vector<128x32xf32>
    %14 = arith.addf %11, %13 : vector<128x32xf32>
    %cst_11 = arith.constant 0.000000e+00 : f32
    %15 = vector.broadcast %cst_11 : f32 to vector<128x32xf32>
    %16 = arith.maximumf %14, %15 : vector<128x32xf32>
    %c0_12 = arith.constant 0 : index
    %c0_13 = arith.constant 0 : index
    %17 = vector.load %arg6[%c0_12, %c0_13] : memref<1x32xf32, #tpu.memory_space<vmem>>, vector<1x32xf32>
    %cst_14 = arith.constant dense<0.000000e+00> : vector<1x128xf32>
    %18 = tpu.matmul %17, %16, %cst_14 {dimension_numbers = #tpu.dot_dimension_numbers<[1], [1], [0], [0], [0, 0, 1, 0], [], []>} : vector<1x32xf32>, vector<128x32xf32>, vector<1x128xf32> -> vector<1x128xf32>
    %c0_15 = arith.constant 0 : index
    %c0_16 = arith.constant 0 : index
    %19 = memref.load %arg7[%c0_15, %c0_16] : memref<1x1xf32, #tpu.memory_space<smem>>
    %20 = vector.broadcast %19 : f32 to vector<1x128xf32>
    %21 = arith.addf %18, %20 : vector<1x128xf32>
    %22 = vector.shape_cast %21 : vector<1x128xf32> to vector<1x1x128xf32>
    %c0_17 = arith.constant 0 : index
    %c0_18 = arith.constant 0 : index
    %c0_19 = arith.constant 0 : index
    %23 = vector.load %arg8[%c0_17, %c0_18, %c0_19] : memref<1x1x128xf32, #tpu.memory_space<vmem>>, vector<1x1x128xf32>
    tpu.vector_store %arg8[%c0_17, %c0_18, %c0_19], %22 {strides = array<i32>} : memref<1x1x128xf32, #tpu.memory_space<vmem>>, vector<1x1x128xf32>,
    return
  }
  func.func @transform_0(%arg0: i32) -> (i32, i32) {
    %c0_i32 = arith.constant 0 : i32
    %c0_i32_0 = arith.constant 0 : i32
    return %arg0, %c0_i32 : i32, i32
  }
  func.func @transform_1(%arg0: i32) -> (i32, i32) {
    %c0_i32 = arith.constant 0 : i32
    %c0_i32_0 = arith.constant 0 : i32
    %c0_i32_1 = arith.constant 0 : i32
    return %c0_i32, %c0_i32_0 : i32, i32
  }
  func.func @transform_2(%arg0: i32) -> (i32, i32) {
    %c0_i32 = arith.constant 0 : i32
    %c0_i32_0 = arith.constant 0 : i32
    %c0_i32_1 = arith.constant 0 : i32
    return %c0_i32, %c0_i32_0 : i32, i32
  }
  func.func @transform_3(%arg0: i32) -> (i32, i32) {
    %c0_i32 = arith.constant 0 : i32
    %c0_i32_0 = arith.constant 0 : i32
    %c0_i32_1 = arith.constant 0 : i32
    return %c0_i32, %c0_i32_0 : i32, i32
  }
  func.func @transform_4(%arg0: i32) -> (i32, i32) {
    %c0_i32 = arith.constant 0 : i32
    %c0_i32_0 = arith.constant 0 : i32
    %c0_i32_1 = arith.constant 0 : i32
    return %c0_i32, %c0_i32_0 : i32, i32
  }
  func.func @transform_5(%arg0: i32) -> (i32, i32) {
    %c0_i32 = arith.constant 0 : i32
    %c0_i32_0 = arith.constant 0 : i32
    %c0_i32_1 = arith.constant 0 : i32
    return %c0_i32, %c0_i32_0 : i32, i32
  }
  func.func @transform_6(%arg0: i32) -> (i32, i32) {
    %c0_i32 = arith.constant 0 : i32
    %c0_i32_0 = arith.constant 0 : i32
    %c0_i32_1 = arith.constant 0 : i32
    return %c0_i32, %c0_i32_0 : i32, i32
  }
  func.func @transform_7(%arg0: i32) -> (i32, i32, i32) {
    %c0_i32 = arith.constant 0 : i32
    %c0_i32_0 = arith.constant 0 : i32
    %c0_i32_1 = arith.constant 0 : i32
    return %arg0, %c0_i32, %c0_i32_0 : i32, i32, i32
  }
}

</mosaic_0001>

<bundles_post_ra>
// kernel: tpu_custom_call.1
= control target key start
LH: loop header
LB: loop body
LE: loop exit
PB: predicated region body
PF: predicated region fallthrough
CT: control target
= control target key end

     0   :  { %s967_s0 = inlined_call_operand.vmem [shape: f32[128,128], index: 0, kind: input, shape index: {}]   ;;  %s968_s1 = inlined_call_operand.vmem [shape: bf16[128,64], index: 1, kind: input, shape index: {}]   ;;  %s969_s2 = inlined_call_operand.vmem [shape: f32[1,64], index: 2, kind: input, shape index: {}]   ;;  %s970_s3 = inlined_call_operand.vmem [shape: bf16[64,32], index: 3, kind: input, shape index: {}]   ;;  %s971_s4 = inlined_call_operand.vmem [shape: f32[1,32], index: 4, kind: input, shape index: {}]   ;;  %s972_s5 = inlined_call_operand.vmem [shape: f32[1,32], index: 5, kind: input, shape index: {}]   ;;  %s973_s6 = inlined_call_operand.<no memory space> [shape: f32[1,1], index: 6, kind: input, shape index: {}]   ;;  %s974_s7 = inlined_call_operand.hbm [shape: f32[1,1,128], index: 7, kind: output, shape index: {}]  }
   0x1   :  { %v740_v0 = vld [vmem:[%s968_s1 + $0x38] sm:$0xff]   ;;  %v741_v1 = vld [vmem:[%s968_s1 + $0x30] sm:$0xff]   ;;  %v742_v2 = vld [vmem:[%s968_s1 + $0x28] sm:$0xff]  }
   0x2   :  { %646 = vmatprep.subr.bf16.mxu0 %v740_v0  ;;  %v743_v3 = vld [vmem:[%s968_s1 + $0x20] sm:$0xff]   ;;  %v30_v5 = vld [vmem:[%s967_s0 + $0x8] sm:$0xff]  ;;  %v744_v7 = vld [vmem:[%s968_s1 + $0x18] sm:$0xff]  }
   0x3   :  { %647 = vmatpush3.bf16.msra.mxu0 %v740_v0  ;;  %v29_v4 = vld [vmem:[%s967_s0] sm:$0xff]  ;;  %v748_v8 = vld [vmem:[%s970_s3 + $0x18] sm:$0xff]   ;;  %v745_v9 = vld [vmem:[%s968_s1 + $0x10] sm:$0xff]  }
   0x4   :  { %648 = vmatprep.subr.bf16.mxu0 %v741_v1  ;;  %v45_v6 = vpack.c.bf16 %v30_v5, %v29_v4  ;;  %678 = vmatprep.subr.bf16.mxu1 %v748_v8 }
   0x6   :  { %662 = vmatprep.mubr.bf16.mxu0 %v45_v6 }
   0x7   :  { %649 = vmatpush3.bf16.msra.mxu0 %v741_v1 }
   0x8   :  { %650 = vmatprep.subr.bf16.mxu0 %v742_v2 }
   0xb   :  { %651 = vmatpush3.bf16.msra.mxu0 %v742_v2 }
   0xc   :  { %652 = vmatprep.subr.bf16.mxu0 %v743_v3 }
   0xf   :  { %653 = vmatpush3.bf16.msra.mxu0 %v743_v3 }
  0x10   :  { %654 = vmatprep.subr.bf16.mxu0 %v744_v7 }
  0x11   :  { %13 = vsyncpa [#allocation4], 0  ;;  %679 = vmatpush3.bf16.msra.mxu1 %v748_v8  ;;  %v746_v10 = vld [vmem:[%s968_s1 + $0x8] sm:$0xff]   ;;  %v747_v11 = vld [vmem:[%s968_s1] sm:$0xff]   ;;  %vm284_vm0 = vcmask 523264   ;;  %vm775_vm1 = vmmov 0  }
  0x12   :  { %v31_v12 = vld [vmem:[%s967_s0 + $0x10] sm:$0xff]  ;;  %v32_v13 = vld [vmem:[%s967_s0 + $0x18] sm:$0xff]  ;;  %v33_v14 = vld [vmem:[%s967_s0 + $0x20] sm:$0xff]  ;;  %vm425_vm2 = vcmask 261120   ;;  %s776_s13 = smov [#allocation3]  }
  0x13   :  { %655 = vmatpush3.bf16.msra.mxu0 %v744_v7  ;;  %v34_v15 = vld [vmem:[%s967_s0 + $0x28] sm:$0xff]  ;;  %v46_v16 = vpack.c.bf16 %v32_v13, %v31_v12  ;;  %v35_v18 = vld [vmem:[%s967_s0 + $0x30] sm:$0xff]  ;;  %v36_v19 = vld [vmem:[%s967_s0 + $0x38] sm:$0xff]  ;;  %s554_s14 = sshll.u32 %s776_s13, 4  ;;  %s555_s14 = int_to_ptr.vmem [resolvable:$true] %s554_s14 }
  0x14   :  { %656 = vmatprep.subr.bf16.mxu0 %v745_v9  ;;  %v47_v17 = vpack.c.bf16 %v34_v15, %v33_v14  ;;  %v37_v20 = vld [vmem:[%s967_s0 + $0x40] sm:$0xff]  ;;  %v38_v21 = vld [vmem:[%s967_s0 + $0x48] sm:$0xff]  ;;  %v48_v22 = vpack.c.bf16 %v36_v19, %v35_v18  ;;  %v39_v24 = vld [vmem:[%s967_s0 + $0x50] sm:$0xff]  ;;  %s752_s15 = scalar_lea.vmem %s555_s14, 16  ;;  %s756_s16 = scalar_lea.vmem %s555_s14, 32 }
  0x15   :  { %v49_v23 = vpack.c.bf16 %v38_v21, %v37_v20  ;;  %v40_v25 = vld [vmem:[%s967_s0 + $0x58] sm:$0xff]  ;;  %v41_v26 = vld [vmem:[%s967_s0 + $0x60] sm:$0xff]  ;;  %v42_v27 = vld [vmem:[%s967_s0 + $0x68] sm:$0xff]  ;;  %p753_p0 = scmp.ne.s32.totalorder %s555_s14, %s752_s15  ;;  %p757_p1 = scmp.lt.s32.totalorder %s555_s14, %s555_s14 }
  0x16   :  { %v50_v28 = vpack.c.bf16 %v40_v25, %v39_v24  ;;  %v51_v29 = vpack.c.bf16 %v42_v27, %v41_v26  ;;  %v43_v30 = vld [vmem:[%s967_s0 + $0x70] sm:$0xff]  ;;  %v44_v31 = vld [vmem:[%s967_s0 + $0x78] sm:$0xff]  ;;  %v750_v34 = vld [vmem:[%s970_s3 + $0x8] sm:$0xff]   ;;  %p758_p2 = scmp.lt.s32.totalorder %s756_s16, %s752_s15 }
  0x17   :  { %657 = vmatpush3.bf16.msra.mxu0 %v745_v9  ;;  %v52_v32 = vpack.c.bf16 %v44_v31, %v43_v30  ;;  %v749_v33 = vld [vmem:[%s970_s3 + $0x10] sm:$0xff]   ;;  %v751_v35 = vld [vmem:[%s970_s3] sm:$0xff]  }
  0x18   :  { %658 = vmatprep.subr.bf16.mxu0 %v746_v10  ;;  %680 = vmatprep.subr.bf16.mxu1 %v749_v33  ;;  %v562_v38 = vld [vmem:[%s969_s2] ss:$0 sm:$0xff]  ;;  %p759_p3 = por %p758_p2, %p757_p1 }
  0x19   :  { %681 = vmatpush3.bf16.msra.mxu1 %v749_v33 }
  0x1a   :  { %682 = vmatprep.subr.bf16.mxu1 %v750_v34  ;;  %p760_p4 = pnand %p759_p3, %p753_p0 }
  0x1b   :  { %659 = vmatpush3.bf16.msra.mxu0 %v746_v10 }
  0x1c   :  { %660 = vmatprep.subr.bf16.mxu0 %v747_v11 }
  0x1d   :  { %683 = vmatpush3.bf16.msra.mxu1 %v750_v34 }
  0x1e   :  { %684 = vmatprep.subr.bf16.mxu1 %v751_v35 }
  0x1f   :  { %661 = vmatpush3.bf16.msra.mxu0 %v747_v11 }
  0x21   :  { %685 = vmatpush3.bf16.msra.mxu1 %v751_v35 }
  0x22   :  { %663 = vmatmul.mubr.bf16.vlgmr.msra.gmra.mxu0 %v46_v16 }
  0x23   :  { %666 = vmatprep.mubr.bf16.mxu0 %v47_v17 }
  0x2a   :  { %667 = vmatmul.mubr.bf16.gmra.mxu0 %v48_v22 }
  0x2b   :  { %670 = vmatprep.mubr.bf16.mxu0 %v49_v23 }
  0x32   :  { %671 = vmatmul.mubr.bf16.gmra.mxu0 %v50_v28 }
  0x33   :  { %674 = vmatprep.mubr.bf16.mxu0 %v51_v29  ;;  %v774_v29 = vmov 0.0  }
  0x34   :  { %702 = vmatprep.subr.mxu1 %v774_v29 }
  0x3a   :  { %675 = vmatmul.mubr.bf16.gmra.mxu0 %v52_v32 }
  0xe2   :  { %v664_v36 = vpop.f32.mrf.mxu0 }
  0xe3   :  { %v167_v42 = vadd.f32 %v664_v36, %v562_v38 }
  0xe4   :  { %v158_v37 = vpop.f32.mrf.mxu0 }
  0xe5   :  { %v159_v40 = vadd.f32 %v562_v38, %v158_v37  ;;  %v223_v49 = vmax.f32 %v167_v42, 0.0 }
  0xe6   :  { %v665_v39 = vpop.f32.mrf.mxu0 }
  0xe7   :  { %v170_v41 = vadd.f32 %v665_v39, %v562_v38  ;;  %v221_v47 = vmax.f32 %v159_v40, 0.0 }
  0xe8   :  { %v161_v43 = vpop.f32.mrf.mxu0 }
  0xe9   :  { %v162_v44 = vadd.f32 %v562_v38, %v161_v43  ;;  %v224_v45 = vmax.f32 %v170_v41, 0.0 }
  0xea   :  { %v668_v46 = vpop.f32.mrf.mxu0 }
  0xeb   :  { %v222_v48 = vmax.f32 %v162_v44, 0.0  ;;  %v238_v52 = vpack.c.bf16 %v224_v45, %v223_v49  ;;  %v183_v56 = vadd.f32 %v668_v46, %v562_v38  ;;  %v571_v44 = vld [vmem:[%s971_s4] ss:$0 sm:$0xff] }
  0xec   :  { %v174_v50 = vpop.f32.mrf.mxu0 }
  0xed   :  { %v237_v51 = vpack.c.bf16 %v222_v48, %v221_v47  ;;  %v175_v54 = vadd.f32 %v562_v38, %v174_v50  ;;  %v227_v63 = vmax.f32 %v183_v56, 0.0 }
  0xee   :  { %v669_v53 = vpop.f32.mrf.mxu0 }
  0xef   :  { %v186_v55 = vadd.f32 %v669_v53, %v562_v38  ;;  %686 = vmatprep.mubr.msk.bf16.mxu1 %vm284_vm0, %v237_v51  ;;  %v225_v61 = vmax.f32 %v175_v54, 0.0 }
  0xf0   :  { %v177_v57 = vpop.f32.mrf.mxu0  ;;  %687 = vmatmul.mubr.msk.bf16.vlgmr.msra.gmra.mxu1 %vm284_vm0, %v238_v52 }
  0xf1   :  { %v178_v58 = vadd.f32 %v562_v38, %v177_v57  ;;  %v228_v59 = vmax.f32 %v186_v55, 0.0 }
  0xf2   :  { %v672_v60 = vpop.f32.mrf.mxu0 }
  0xf3   :  { %v226_v62 = vmax.f32 %v178_v58, 0.0  ;;  %v240_v2 = vpack.c.bf16 %v228_v59, %v227_v63  ;;  %v199_v6 = vadd.f32 %v672_v60, %v562_v38 }
  0xf4   :  { %v190_v0 = vpop.f32.mrf.mxu0 }
  0xf5   :  { %v239_v1 = vpack.c.bf16 %v226_v62, %v225_v61  ;;  %v191_v4 = vadd.f32 %v562_v38, %v190_v0  ;;  %v231_v13 = vmax.f32 %v199_v6, 0.0 }
  0xf6   :  { %v673_v3 = vpop.f32.mrf.mxu0 }
  0xf7   :  { %v202_v5 = vadd.f32 %v673_v3, %v562_v38  ;;  %690 = vmatprep.mubr.msk.bf16.mxu1 %vm284_vm0, %v239_v1  ;;  %v229_v11 = vmax.f32 %v191_v4, 0.0 }
  0xf8   :  { %v193_v7 = vpop.f32.mrf.mxu0  ;;  %691 = vmatmul.mubr.msk.bf16.gmra.mxu1 %vm284_vm0, %v240_v2 }
  0xf9   :  { %v194_v8 = vadd.f32 %v562_v38, %v193_v7  ;;  %v232_v9 = vmax.f32 %v202_v5, 0.0 }
  0xfa   :  { %v676_v10 = vpop.f32.mrf.mxu0 }
  0xfb   :  { %v230_v12 = vmax.f32 %v194_v8, 0.0  ;;  %v242_v16 = vpack.c.bf16 %v232_v9, %v231_v13  ;;  %v215_v20 = vadd.f32 %v676_v10, %v562_v38 }
  0xfc   :  { %v206_v14 = vpop.f32.mrf.mxu0 }
  0xfd   :  { %v241_v15 = vpack.c.bf16 %v230_v12, %v229_v11  ;;  %v207_v18 = vadd.f32 %v562_v38, %v206_v14  ;;  %v235_v26 = vmax.f32 %v215_v20, 0.0 }
  0xfe   :  { %v677_v17 = vpop.f32.mrf.mxu0 }
  0xff   :  { %v218_v19 = vadd.f32 %v677_v17, %v562_v38  ;;  %694 = vmatprep.mubr.msk.bf16.mxu1 %vm284_vm0, %v241_v15  ;;  %v233_v24 = vmax.f32 %v207_v18, 0.0  ;;  %v422_v15 = vld [vmem:[%s972_s5] sm:$0x1] }
 0x100   :  { %v209_v21 = vpop.f32.mrf.mxu0  ;;  %695 = vmatmul.mubr.msk.bf16.gmra.mxu1 %vm284_vm0, %v242_v16  ;;  %v424_v16 = vstv %s973_s6 }
 0x101   :  { %v210_v22 = vadd.f32 %v562_v38, %v209_v21  ;;  %v236_v23 = vmax.f32 %v218_v19, 0.0 }
 0x103   :  { %v234_v25 = vmax.f32 %v210_v22, 0.0  ;;  %v244_v28 = vpack.c.bf16 %v236_v23, %v235_v26 }
 0x105   :  { %v243_v27 = vpack.c.bf16 %v234_v25, %v233_v24 }
 0x107   :  { %698 = vmatprep.mubr.msk.bf16.mxu1 %vm284_vm0, %v243_v27 }
 0x108   :  { %699 = vmatmul.mubr.msk.bf16.gmra.mxu1 %vm284_vm0, %v244_v28 }
 0x109   :  { %734 = vmatprep.mubr.msk.f32.mxu1 %vm775_vm1, %v774_v29 }
 0x1b0   :  { %v914_v30 = vpop.f32.mrf.mxu1 }
 0x1b1   :  { %v352_v8 = vadd.f32 %v914_v30, %v571_v44 }
 0x1b2   :  { %v916_v31 = vpop.f32.mrf.mxu1 }
 0x1b3   :  { %v408_v10 = vmax.f32 %v352_v8, 0.0  ;;  %v344_v12 = vadd.f32 %v571_v44, %v916_v31 }
 0x1b4   :  { %v689_v32 = vpop.f32.mrf.mxu1 }
 0x1b5   :  { %v355_v6 = vadd.f32 %v689_v32, %v571_v44  ;;  %v406_v14 = vmax.f32 %v344_v12, 0.0 }
 0x1b6   :  { %v918_v33 = vpop.f32.mrf.mxu1 }
 0x1b7   :  { %v409_v9 = vmax.f32 %v355_v6, 0.0  ;;  %v347_v11 = vadd.f32 %v571_v44, %v918_v33 }
 0x1b8   :  { %v692_v34 = vpop.f32.mrf.mxu1 }
 0x1b9   :  { %v368_v0 = vadd.f32 %v692_v34, %v571_v44  ;;  %v407_v13 = vmax.f32 %v347_v11, 0.0 }
 0x1ba   :  { %v359_v35 = vpop.f32.mrf.mxu1 }
 0x1bb   :  { %v412_v2 = vmax.f32 %v368_v0, 0.0  ;;  %v360_v4 = vadd.f32 %v571_v44, %v359_v35 }
 0x1bc   :  { %v693_v36 = vpop.f32.mrf.mxu1 }
 0x1bd   :  { %v371_v62 = vadd.f32 %v693_v36, %v571_v44  ;;  %v410_v7 = vmax.f32 %v360_v4, 0.0 }
 0x1be   :  { %v362_v37 = vpop.f32.mrf.mxu1 }
 0x1bf   :  { %v413_v1 = vmax.f32 %v371_v62, 0.0  ;;  %v363_v3 = vadd.f32 %v571_v44, %v362_v37 }
 0x1c0   :  { %v696_v38 = vpop.f32.mrf.mxu1 }
 0x1c1   :  { %v384_v56 = vadd.f32 %v696_v38, %v571_v44  ;;  %v411_v5 = vmax.f32 %v363_v3, 0.0 }
 0x1c2   :  { %v375_v39 = vpop.f32.mrf.mxu1 }
 0x1c3   :  { %v416_v58 = vmax.f32 %v384_v56, 0.0  ;;  %v376_v60 = vadd.f32 %v571_v44, %v375_v39 }
 0x1c4   :  { %v697_v40 = vpop.f32.mrf.mxu1 }
 0x1c5   :  { %v387_v54 = vadd.f32 %v697_v40, %v571_v44  ;;  %v414_v63 = vmax.f32 %v376_v60, 0.0 }
 0x1c6   :  { %v378_v41 = vpop.f32.mrf.mxu1 }
 0x1c7   :  { %v417_v57 = vmax.f32 %v387_v54, 0.0  ;;  %v379_v59 = vadd.f32 %v571_v44, %v378_v41 }
 0x1c8   :  { %v700_v42 = vpop.f32.mrf.mxu1 }
 0x1c9   :  { %v400_v47 = vadd.f32 %v700_v42, %v571_v44  ;;  %v415_v61 = vmax.f32 %v379_v59, 0.0 }
 0x1ca   :  { %v391_v43 = vpop.f32.mrf.mxu1 }
 0x1cb   :  { %v420_v50 = vmax.f32 %v400_v47, 0.0  ;;  %v392_v52 = vadd.f32 %v571_v44, %v391_v43 }
 0x1cc   :  { %v701_v45 = vpop.f32.mrf.mxu1 }
 0x1cd   :  { %v403_v46 = vadd.f32 %v701_v45, %v571_v44  ;;  %v418_v55 = vmax.f32 %v392_v52, 0.0 }
 0x1ce   :  { %v394_v49 = vpop.f32.mrf.mxu1 }
 0x1cf   :  { %v421_v48 = vmax.f32 %v403_v46, 0.0  ;;  %v395_v51 = vadd.f32 %v571_v44, %v394_v49 }
 0x1d1   :  { %703 = vmatpush3.xpose.msk.msra.mxu1 %vm425_vm2, %v421_v48  ;;  %v419_v53 = vmax.f32 %v395_v51, 0.0 }
 0x1d2   :  { %704 = vmatprep.subr.mxu1 %v774_v29 }
 0x1d5   :  { %705 = vmatpush3.xpose.msk.msra.mxu1 %vm425_vm2, %v420_v50 }
 0x1d6   :  { %706 = vmatprep.subr.mxu1 %v774_v29 }
 0x1d9   :  { %707 = vmatpush3.xpose.msk.msra.mxu1 %vm425_vm2, %v419_v53 }
 0x1da   :  { %708 = vmatprep.subr.mxu1 %v774_v29 }
 0x1dd   :  { %709 = vmatpush3.xpose.msk.msra.mxu1 %vm425_vm2, %v418_v55 }
 0x1de   :  { %710 = vmatprep.subr.mxu1 %v774_v29 }
 0x1e1   :  { %711 = vmatpush3.xpose.msk.msra.mxu1 %vm425_vm2, %v417_v57 }
 0x1e2   :  { %712 = vmatprep.subr.mxu1 %v774_v29 }
 0x1e5   :  { %713 = vmatpush3.xpose.msk.msra.mxu1 %vm425_vm2, %v416_v58 }
 0x1e6   :  { %714 = vmatprep.subr.mxu1 %v774_v29 }
 0x1e9   :  { %715 = vmatpush3.xpose.msk.msra.mxu1 %vm425_vm2, %v415_v61 }
 0x1ea   :  { %716 = vmatprep.subr.mxu1 %v774_v29 }
 0x1ed   :  { %717 = vmatpush3.xpose.msk.msra.mxu1 %vm425_vm2, %v414_v63 }
 0x1ee   :  { %718 = vmatprep.subr.mxu1 %v774_v29 }
 0x1f1   :  { %719 = vmatpush3.xpose.msk.msra.mxu1 %vm425_vm2, %v413_v1 }
 0x1f2   :  { %720 = vmatprep.subr.mxu1 %v774_v29 }
 0x1f5   :  { %721 = vmatpush3.xpose.msk.msra.mxu1 %vm425_vm2, %v412_v2 }
 0x1f6   :  { %722 = vmatprep.subr.mxu1 %v774_v29 }
 0x1f9   :  { %723 = vmatpush3.xpose.msk.msra.mxu1 %vm425_vm2, %v411_v5 }
 0x1fa   :  { %724 = vmatprep.subr.mxu1 %v774_v29 }
 0x1fd   :  { %725 = vmatpush3.xpose.msk.msra.mxu1 %vm425_vm2, %v410_v7 }
 0x1fe   :  { %726 = vmatprep.subr.mxu1 %v774_v29 }
 0x201   :  { %727 = vmatpush3.xpose.msk.msra.mxu1 %vm425_vm2, %v409_v9 }
 0x202   :  { %728 = vmatprep.subr.mxu1 %v774_v29 }
 0x205   :  { %729 = vmatpush3.xpose.msk.msra.mxu1 %vm425_vm2, %v408_v10 }
 0x206   :  { %730 = vmatprep.subr.mxu1 %v774_v29 }
 0x209   :  { %731 = vmatpush3.xpose.msk.msra.mxu1 %vm425_vm2, %v407_v13 }
 0x20a   :  { %732 = vmatprep.subr.mxu1 %v774_v29 }
 0x20d   :  { %733 = vmatpush3.xpose.msk.msra.mxu1 %vm425_vm2, %v406_v14 }
 0x210   :  { %735 = vmatmul.mubr.msk.f32.vlgmr.msra.gmra.mxu1 %vm425_vm2, %v422_v15 }
 0x2d0   :  { %v543_v17 = vpop.f32.mrf.mxu1 }
 0x2d1   :  { %v544_v18 = vadd.f32 %v543_v17, %v424_v16 }
 0x2d2   :  { %v736_v19 = vpop.f32.mrf.mxu1 }
 0x2d3   :  { %547 = vst [vmem:[#allocation3] sm:$0x1] %v544_v18 }
 0x2d4   :  { %763 = shalt.err (!%p760_p4)
}
 0x2d5   :  { %557 = dma.vmem_to_hbm [thread:$0]  %s555_s14, 16, %s974_s7, [#allocation4]  }
 0x2d6   :  { %772 = dma.done.wait [#allocation4], 16  }
 0x2d7   :  { %773 = vsyncadd [#allocation4], 4294967280 }
 0x2d8   :  { %561 = vsyncpa [#allocation4], 1 }

</bundles_post_ra>
